<compile_context>
chip_gen: v6e
topology: v6e:2x2x1
jax: 0.10.0
libtpu: 0.0.40
codegen_flags: <defaults>
</compile_context>

<pallas_src>
import functools

import jax
import jax.numpy as jnp
from jax.experimental import pallas as pl
from jax.experimental.pallas import tpu as pltpu


_VMEM_LIMIT_BYTES = 48 * 1024 * 1024   # <= v7x 64 MiB physical; plenty on v5e/v6e
_MAX_FUSED_TABLE_ROWS = 4096           # one-hot (tm, rows) gather stays cheap below


def _round_up(x, m):
    return ((x + m - 1) // m) * m


def _pick_tile(M, bytes_per_row, *, tm_max, vmem_budget):
    """Large tile to amortize per-grid-step overhead, capped by (a) a VMEM budget
    and (b) grid >= 8 when possible so v7x can shard the parallel axis across its
    two TensorCores (v5e/v6e have one TC; the cap is harmless there)."""
    tm_cap_mem = max(8, vmem_budget // max(1, bytes_per_row))
    tm_cap_grid = _round_up(max(1, (M + 7) // 8), 8)
    tm = int(min(tm_max, tm_cap_mem, tm_cap_grid))
    return max(8, (tm // 8) * 8)


def _score_terms(s_re, s_im, r_re, r_im, rs_re, rs_im, ro_re, ro_im,
                 o_re, o_im, t_re, t_im, *, srt_wt, ort_wt, sot_wt):
    """Un-reduced score terms, factored around the (s_re, s_im) / (t_re, t_im)
    anchors.  Weights are Python floats baked in at trace time: zero-weight
    terms are skipped statically and *1.0 multiplies are elided."""
    def wscale(w, v):
        return v if w == 1.0 else w * v

    # s-anchored: sro (weight 1) + srt_wt*srt + sot_wt*sot
    a_re = r_re * o_re + r_im * o_im
    a_im = r_re * o_im - r_im * o_re
    if srt_wt != 0.0:
        a_re = a_re + wscale(srt_wt, rs_re * t_re + rs_im * t_im)
        a_im = a_im + wscale(srt_wt, rs_re * t_im - rs_im * t_re)
    if sot_wt != 0.0:
        a_re = a_re + wscale(sot_wt, t_re * o_re + t_im * o_im)
        a_im = a_im + wscale(sot_wt, t_re * o_im - t_im * o_re)
    acc = s_re * a_re + s_im * a_im

    # t-anchored: ort_wt * ort
    if ort_wt != 0.0:
        b_re = ro_re * o_re + ro_im * o_im
        b_im = ro_re * o_im - ro_im * o_re
        acc = acc + wscale(ort_wt, t_re * b_re + t_im * b_im)
    return acc


# ---------------------------------------------------------------------------
# Fused-gather kernel (default path): tables VMEM-resident, indices streamed.
# ---------------------------------------------------------------------------
def _timeplex_fused_kernel(idx_ref, ent_ref, rel_ref, tim_ref, out_ref, *,
                           D, srt_wt, ort_wt, sot_wt):
    """idx_ref: (tm, 4) int32 columns [s, r, o, t]
       ent_ref: (E_pad, 2D)  [E_re | E_im]
       rel_ref: (R_pad, 6D)  [R_re | R_im | Rs_re | Rs_im | Ro_re | Ro_im]
       tim_ref: (T_pad, 2D)  [Ts_re | Ts_im]
       out_ref: (tm, 1) f32 scores."""
    tm = idx_ref.shape[0]

    def gather(table_ref, col):
        n = table_ref.shape[0]
        idx = idx_ref[:, col:col + 1]                                   # (tm, 1)
        iota = jax.lax.broadcasted_iota(jnp.int32, (tm, n), 1)
        onehot = (iota == idx).astype(jnp.float32)                      # (tm, n)
        # Exact row gather (one-hot rows) on the otherwise-idle MXU.
        return jnp.dot(onehot, table_ref[...],
                       preferred_element_type=jnp.float32)

    s_emb = gather(ent_ref, 0)    # (tm, 2D)
    r_emb = gather(rel_ref, 1)    # (tm, 6D)
    o_emb = gather(ent_ref, 2)    # (tm, 2D)
    t_emb = gather(tim_ref, 3)    # (tm, 2D)

    # TODO(synk): with D=32 these chunks are 32-lane values (25% VPU lane
    # utilization).  On v7x (HBM no longer binding after the fused gather) a
    # further win is to pack 4 streams per 128-lane operand (or repack 4 rows
    # into lanes) so elementwise math runs lane-dense; skipped here for clarity.
    s_re, s_im = s_emb[:, 0 * D:1 * D], s_emb[:, 1 * D:2 * D]
    r_re, r_im = r_emb[:, 0 * D:1 * D], r_emb[:, 1 * D:2 * D]
    rs_re, rs_im = r_emb[:, 2 * D:3 * D], r_emb[:, 3 * D:4 * D]
    ro_re, ro_im = r_emb[:, 4 * D:5 * D], r_emb[:, 5 * D:6 * D]
    o_re, o_im = o_emb[:, 0 * D:1 * D], o_emb[:, 1 * D:2 * D]
    t_re, t_im = t_emb[:, 0 * D:1 * D], t_emb[:, 1 * D:2 * D]

    acc = _score_terms(s_re, s_im, r_re, r_im, rs_re, rs_im, ro_re, ro_im,
                       o_re, o_im, t_re, t_im,
                       srt_wt=srt_wt, ort_wt=ort_wt, sot_wt=sot_wt)
    # Column store: output traffic is 4 B/row, far cheaper than a lane relayout.
    out_ref[...] = jnp.sum(acc, axis=-1, keepdims=True)


def timeplex_score_fused(idx, ent_tab, rel_tab, tim_tab, *, D,
                         srt_wt=1.0, ort_wt=1.0, sot_wt=0.0, tm_max=2048):
    """idx: [M, 4] int32 (s, r, o, t). Returns [M] f32 scores."""
    M = idx.shape[0]
    n_ent, w_ent = ent_tab.shape
    n_rel, w_rel = rel_tab.shape
    n_tim, w_tim = tim_tab.shape

    # Rough per-row VMEM footprint (f32): gathered rows + lane-padded one-hots +
    # elementwise temporaries; double-buffered idx/out blocks are negligible.
    def lane_pad(n):
        return max(128, _round_up(n, 128))
    per_row = 4 * (12 * D + lane_pad(n_ent) + lane_pad(n_rel) + lane_pad(n_tim)
                   + 16 * D) + 2 * (16 + 4)
    table_bytes = 4 * (ent_tab.size + rel_tab.size + tim_tab.size)
    budget = _VMEM_LIMIT_BYTES - 2 * table_bytes - (4 << 20)
    tm = _pick_tile(M, per_row, tm_max=tm_max, vmem_budget=budget)

    Mp = _round_up(M, tm)
    if Mp != M:
        idx = jnp.pad(idx, ((0, Mp - M), (0, 0)))     # padded rows gather row 0
    grid = Mp // tm

    kern = functools.partial(_timeplex_fused_kernel, D=D, srt_wt=float(srt_wt),
                             ort_wt=float(ort_wt), sot_wt=float(sot_wt))

    gather_flops = Mp * D * (8 * n_ent + 12 * n_rel + 4 * n_tim)
    cost = pl.CostEstimate(flops=int(gather_flops + 30 * Mp * D),
                           transcendentals=0,
                           bytes_accessed=int(Mp * 16 + Mp * 4 + table_bytes))

    out = pl.pallas_call(
        kern,
        out_shape=jax.ShapeDtypeStruct((Mp, 1), jnp.float32),
        grid_spec=pltpu.PrefetchScalarGridSpec(
            num_scalar_prefetch=0,
            grid=(grid,),
            in_specs=[
                pl.BlockSpec((tm, 4), lambda i: (i, 0)),
                # Grid-invariant full-block tables: DMA'd to VMEM once.
                pl.BlockSpec((n_ent, w_ent), lambda i: (0, 0)),
                pl.BlockSpec((n_rel, w_rel), lambda i: (0, 0)),
                pl.BlockSpec((n_tim, w_tim), lambda i: (0, 0)),
            ],
            out_specs=pl.BlockSpec((tm, 1), lambda i: (i, 0)),
        ),
        compiler_params=pltpu.CompilerParams(
            dimension_semantics=("parallel",),
            vmem_limit_bytes=_VMEM_LIMIT_BYTES),
        cost_estimate=cost,
    )(idx, ent_tab, rel_tab, tim_tab)
    return out.reshape(Mp)[:M]


# ---------------------------------------------------------------------------
# Slab fallback (production-size tables that should not live in VMEM): stream a
# lane-dense [M, 12*D] concatenated slab built by XLA's fused gather+concat.
# ---------------------------------------------------------------------------
def _timeplex_slab_kernel(x_ref, out_ref, *, D, srt_wt, ort_wt, sot_wt):
    """x_ref: (tm, 12*D) f32; out_ref: (tm, 1) f32."""
    def chunk(k):   # read each chunk straight from the ref (no monolithic load)
        return x_ref[:, k * D:(k + 1) * D]

    acc = _score_terms(chunk(0), chunk(1), chunk(2), chunk(3),
                       chunk(4), chunk(5), chunk(6), chunk(7),
                       chunk(8), chunk(9), chunk(10), chunk(11),
                       srt_wt=srt_wt, ort_wt=ort_wt, sot_wt=sot_wt)
    out_ref[...] = jnp.sum(acc, axis=-1, keepdims=True)


def timeplex_score_slab(emb_cat, *, D, srt_wt=1.0, ort_wt=1.0, sot_wt=0.0,
                        tm_max=2048):
    """emb_cat: [M, 12*D] f32 concatenated embeddings. Returns [M] scores."""
    M, F = emb_cat.shape
    assert F == 12 * D, (F, D)
    bytes_per_row = 3 * F * 4          # double-buffered input + temporaries
    budget = _VMEM_LIMIT_BYTES - (4 << 20)
    tm = _pick_tile(M, bytes_per_row, tm_max=tm_max, vmem_budget=budget)

    Mp = _round_up(M, tm)
    if Mp != M:
        emb_cat = jnp.pad(emb_cat, ((0, Mp - M), (0, 0)))
    grid = Mp // tm

    kern = functools.partial(_timeplex_slab_kernel, D=D, srt_wt=float(srt_wt),
                             ort_wt=float(ort_wt), sot_wt=float(sot_wt))
    cost = pl.CostEstimate(flops=int(30 * Mp * D), transcendentals=0,
                           bytes_accessed=int(Mp * F * 4 + Mp * 4))

    out = pl.pallas_call(
        kern,
        out_shape=jax.ShapeDtypeStruct((Mp, 1), jnp.float32),
        grid_spec=pltpu.PrefetchScalarGridSpec(
            num_scalar_prefetch=0,
            grid=(grid,),
            in_specs=[pl.BlockSpec((tm, F), lambda i: (i, 0))],
            out_specs=pl.BlockSpec((tm, 1), lambda i: (i, 0)),
        ),
        compiler_params=pltpu.CompilerParams(
            dimension_semantics=("parallel",),
            vmem_limit_bytes=_VMEM_LIMIT_BYTES),
        cost_estimate=cost,
    )(emb_cat)
    return out.reshape(Mp)[:M]


# ---------------------------------------------------------------------------
# Forward pass (mirrors TimePlex_base.forward for the s/r/o/t-given branch)
# ---------------------------------------------------------------------------
def timeplex_forward(params, s, r, o, t, *, srt_wt=1.0, ort_wt=1.0, sot_wt=0.0,
                     force_path=None):
    """s, r, o: int [B, N]; t: int [B, N, 6]. Returns float32 [B, N]."""
    t = t[:, :, 0]                     # torch: t = t[:, :, time_index['t_s']]
    B, N = s.shape
    D = params["E_re"].shape[1]
    s_f, r_f, o_f, t_f = (x.reshape(-1).astype(jnp.int32) for x in (s, r, o, t))

    n_ent = params["E_re"].shape[0]
    n_rel = params["R_re"].shape[0]
    n_tim = params["Ts_re"].shape[0]
    use_fused = max(n_ent, n_rel, n_tim) <= _MAX_FUSED_TABLE_ROWS
    if force_path is not None:
        use_fused = (force_path == "fused")

    if use_fused:
        # Pack tables once (tiny; in production they would be pre-packed).
        def pad8(a):
            return jnp.pad(a, ((0, _round_up(a.shape[0], 8) - a.shape[0]), (0, 0)))
        ent_tab = pad8(jnp.concatenate([params["E_re"], params["E_im"]], axis=-1))
        rel_tab = pad8(jnp.concatenate(
            [params["R_re"], params["R_im"], params["Rs_re"], params["Rs_im"],
             params["Ro_re"], params["Ro_im"]], axis=-1))
        tim_tab = pad8(jnp.concatenate([params["Ts_re"], params["Ts_im"]], axis=-1))
        idx = jnp.stack([s_f, r_f, o_f, t_f], axis=-1)            # (M, 4) int32
        score = timeplex_score_fused(idx, ent_tab, rel_tab, tim_tab, D=D,
                                     srt_wt=srt_wt, ort_wt=ort_wt, sot_wt=sot_wt)
    else:
        # Fallback: one lane-dense [M, 12*D] slab (XLA fuses the gathers+concat).
        emb_cat = jnp.concatenate([
            params["E_re"][s_f], params["E_im"][s_f],
            params["R_re"][r_f], params["R_im"][r_f],
            params["Rs_re"][r_f], params["Rs_im"][r_f],
            params["Ro_re"][r_f], params["Ro_im"][r_f],
            params["E_re"][o_f], params["E_im"][o_f],
            params["Ts_re"][t_f], params["Ts_im"][t_f],
        ], axis=-1)
        score = timeplex_score_slab(emb_cat, D=D, srt_wt=srt_wt, ort_wt=ort_wt,
                                    sot_wt=sot_wt)
    return score.reshape(B, N)


def timeplex_forward_ref(params, s, r, o, t, *, srt_wt=1.0, ort_wt=1.0, sot_wt=0.0):
    """Pure-JAX reference mirroring the torch ordering exactly."""
    t = t[:, :, 0]
    s_re, s_im = params["E_re"][s], params["E_im"][s]
    r_re, r_im = params["R_re"][r], params["R_im"][r]
    rs_re, rs_im = params["Rs_re"][r], params["Rs_im"][r]
    ro_re, ro_im = params["Ro_re"][r], params["Ro_im"][r]
    o_re, o_im = params["E_re"][o], params["E_im"][o]
    t_re, t_im = params["Ts_re"][t], params["Ts_im"][t]

    def c3(a_re, a_im, b_re, b_im, c_re, c_im):
        return jnp.sum(a_re * (b_re * c_re + b_im * c_im)
                       + a_im * (b_re * c_im - b_im * c_re), axis=-1)

    sro = c3(s_re, s_im, r_re, r_im, o_re, o_im)
    srt = c3(s_re, s_im, rs_re, rs_im, t_re, t_im)
    ort = c3(t_re, t_im, ro_re, ro_im, o_re, o_im)
    sot = c3(s_re, s_im, t_re, t_im, o_re, o_im)
    return sro + srt_wt * srt + ort_wt * ort + sot_wt * sot


def init_params(key, entity_count, relation_count, timeInterval_count, D):
    names_shapes = {
        "E_re": (entity_count, D), "E_im": (entity_count, D),
        "R_re": (2 * relation_count, D), "R_im": (2 * relation_count, D),
        "Rs_re": (2 * relation_count, D), "Rs_im": (2 * relation_count, D),
        "Ro_re": (2 * relation_count, D), "Ro_im": (2 * relation_count, D),
        "Ts_re": (timeInterval_count + 2, D), "Ts_im": (timeInterval_count + 2, D),
        "To_re": (timeInterval_count + 2, D), "To_im": (timeInterval_count + 2, D),
    }
    params = {}
    for i, (name, shape) in enumerate(sorted(names_shapes.items())):
        k = jax.random.fold_in(key, i)
        params[name] = 0.05 * jax.random.normal(k, shape, dtype=jnp.float32)
    return params


if __name__ == "__main__":
    key = jax.random.PRNGKey(0)

    entity_count = 40
    relation_count = 6
    timeInterval_count = 20
    D = 32          # embedding_dim

    params = init_params(key, entity_count, relation_count, timeInterval_count, D)

    fwd_fused = jax.jit(functools.partial(timeplex_forward, force_path="fused"))
    fwd_slab = jax.jit(functools.partial(timeplex_forward, force_path="slab"))

    def make_inputs(seed, B, N):
        ks, kr, ko, kt = jax.random.split(jax.random.fold_in(key, seed), 4)
        s = jax.random.randint(ks, (B, N), 0, entity_count, dtype=jnp.int32)
        r = jax.random.randint(kr, (B, N), 0, relation_count, dtype=jnp.int32)
        o = jax.random.randint(ko, (B, N), 0, entity_count, dtype=jnp.int32)
        # t carries the 6 time-index fields; forward keeps only field 0 (t_s)
        t = jax.random.randint(kt, (B, N, 6), 0, timeInterval_count, dtype=jnp.int32)
        return s, r, o, t

    # Test 1: toy batch (grid = 1)
    s, r, o, t = make_inputs(100, 8, 1)
    out_f = jax.block_until_ready(fwd_fused(params, s, r, o, t))
    out_s = jax.block_until_ready(fwd_slab(params, s, r, o, t))
    ref = timeplex_forward_ref(params, s, r, o, t)
    assert out_f.shape == (8, 1), out_f.shape
    assert jnp.allclose(out_f, ref, atol=1e-5, rtol=1e-5), (out_f, ref)
    assert jnp.allclose(out_s, ref, atol=1e-5, rtol=1e-5), (out_s, ref)

    # Test 2: multi-tile case (exercises grid > 1 and row padding on both paths)
    s2, r2, o2, t2 = make_inputs(200, 200, 5)
    out_f2 = jax.block_until_ready(fwd_fused(params, s2, r2, o2, t2))
    out_s2 = jax.block_until_ready(fwd_slab(params, s2, r2, o2, t2))
    ref2 = timeplex_forward_ref(params, s2, r2, o2, t2)
    assert out_f2.shape == (200, 5), out_f2.shape
    assert jnp.allclose(out_f2, ref2, atol=1e-5, rtol=1e-5)
    assert jnp.allclose(out_s2, ref2, atol=1e-5, rtol=1e-5)

    # TODO(synk): the t=None (score-against-all-times) and
    # complex_3way_fullsoftmax (score-against-all-entities) branches are
    # argument-presence-dependent and are not implemented here.
    print("KERNEL_OK")
</pallas_src>

<mosaic_0001>
module attributes {stable_mosaic.version = 11 : i64} {
  func.func @_timeplex_fused_kernel(%arg0: i32, %arg1: memref<8x4xi32, #tpu.memory_space<vmem>>, %arg2: memref<40x64xf32, #tpu.memory_space<vmem>>, %arg3: memref<16x192xf32, #tpu.memory_space<vmem>>, %arg4: memref<24x64xf32, #tpu.memory_space<vmem>>, %arg5: memref<8x1xf32, #tpu.memory_space<vmem>>) attributes {dimension_semantics = [#tpu.dimension_semantics<parallel>], iteration_bounds = array<i64: 1>, scalar_prefetch = 0 : i64, scratch_operands = 0 : i64, tpu.core_type = #tpu.core_type<tc>, window_params = [{transform_indices = @transform_0, window_bounds = array<i64: 8, 4>}, {pipeline_mode = #tpu.pipeline_mode<synchronous>, transform_indices = @transform_1, window_bounds = array<i64: 40, 64>}, {pipeline_mode = #tpu.pipeline_mode<synchronous>, transform_indices = @transform_2, window_bounds = array<i64: 16, 192>}, {pipeline_mode = #tpu.pipeline_mode<synchronous>, transform_indices = @transform_3, window_bounds = array<i64: 24, 64>}, {transform_indices = @transform_4, window_bounds = array<i64: 8, 1>}]} {
    %c0 = arith.constant 0 : index
    %c0_0 = arith.constant 0 : index
    %0 = vector.load %arg1[%c0, %c0_0] : memref<8x4xi32, #tpu.memory_space<vmem>>, vector<8x1xi32>
    %1 = tpu.iota {dimensions = array<i32: 1>} : vector<8x40xi32>
    %2 = vector.broadcast %0 : vector<8x1xi32> to vector<8x40xi32>
    %3 = arith.cmpi eq, %1, %2 : vector<8x40xi32>
    %4 = arith.extui %3 : vector<8x40xi1> to vector<8x40xi32>
    %5 = arith.sitofp %4 : vector<8x40xi32> to vector<8x40xf32>
    %c0_1 = arith.constant 0 : index
    %c0_2 = arith.constant 0 : index
    %6 = vector.load %arg2[%c0_1, %c0_2] : memref<40x64xf32, #tpu.memory_space<vmem>>, vector<40x64xf32>
    %cst = arith.constant dense<0.000000e+00> : vector<8x64xf32>
    %7 = tpu.matmul %5, %6, %cst {dimension_numbers = #tpu.dot_dimension_numbers<[1], [0], [0], [1], [0, 0, 1, 1], [], []>} : vector<8x40xf32>, vector<40x64xf32>, vector<8x64xf32> -> vector<8x64xf32>
    %c0_3 = arith.constant 0 : index
    %c1 = arith.constant 1 : index
    %8 = vector.load %arg1[%c0_3, %c1] : memref<8x4xi32, #tpu.memory_space<vmem>>, vector<8x1xi32>
    %9 = tpu.iota {dimensions = array<i32: 1>} : vector<8x16xi32>
    %10 = vector.broadcast %8 : vector<8x1xi32> to vector<8x16xi32>
    %11 = arith.cmpi eq, %9, %10 : vector<8x16xi32>
    %12 = arith.extui %11 : vector<8x16xi1> to vector<8x16xi32>
    %13 = arith.sitofp %12 : vector<8x16xi32> to vector<8x16xf32>
    %c0_4 = arith.constant 0 : index
    %c0_5 = arith.constant 0 : index
    %14 = vector.load %arg3[%c0_4, %c0_5] : memref<16x192xf32, #tpu.memory_space<vmem>>, vector<16x192xf32>
    %cst_6 = arith.constant dense<0.000000e+00> : vector<8x192xf32>
    %15 = tpu.matmul %13, %14, %cst_6 {dimension_numbers = #tpu.dot_dimension_numbers<[1], [0], [0], [1], [0, 0, 1, 1], [], []>} : vector<8x16xf32>, vector<16x192xf32>, vector<8x192xf32> -> vector<8x192xf32>
    %c0_7 = arith.constant 0 : index
    %c2 = arith.constant 2 : index
    %16 = vector.load %arg1[%c0_7, %c2] : memref<8x4xi32, #tpu.memory_space<vmem>>, vector<8x1xi32>
    %17 = tpu.iota {dimensions = array<i32: 1>} : vector<8x40xi32>
    %18 = vector.broadcast %16 : vector<8x1xi32> to vector<8x40xi32>
    %19 = arith.cmpi eq, %17, %18 : vector<8x40xi32>
    %20 = arith.extui %19 : vector<8x40xi1> to vector<8x40xi32>
    %21 = arith.sitofp %20 : vector<8x40xi32> to vector<8x40xf32>
    %c0_8 = arith.constant 0 : index
    %c0_9 = arith.constant 0 : index
    %22 = vector.load %arg2[%c0_8, %c0_9] : memref<40x64xf32, #tpu.memory_space<vmem>>, vector<40x64xf32>
    %cst_10 = arith.constant dense<0.000000e+00> : vector<8x64xf32>
    %23 = tpu.matmul %21, %22, %cst_10 {dimension_numbers = #tpu.dot_dimension_numbers<[1], [0], [0], [1], [0, 0, 1, 1], [], []>} : vector<8x40xf32>, vector<40x64xf32>, vector<8x64xf32> -> vector<8x64xf32>
    %c0_11 = arith.constant 0 : index
    %c3 = arith.constant 3 : index
    %24 = vector.load %arg1[%c0_11, %c3] : memref<8x4xi32, #tpu.memory_space<vmem>>, vector<8x1xi32>
    %25 = tpu.iota {dimensions = array<i32: 1>} : vector<8x24xi32>
    %26 = vector.broadcast %24 : vector<8x1xi32> to vector<8x24xi32>
    %27 = arith.cmpi eq, %25, %26 : vector<8x24xi32>
    %28 = arith.extui %27 : vector<8x24xi1> to vector<8x24xi32>
    %29 = arith.sitofp %28 : vector<8x24xi32> to vector<8x24xf32>
    %c0_12 = arith.constant 0 : index
    %c0_13 = arith.constant 0 : index
    %30 = vector.load %arg4[%c0_12, %c0_13] : memref<24x64xf32, #tpu.memory_space<vmem>>, vector<24x64xf32>
    %cst_14 = arith.constant dense<0.000000e+00> : vector<8x64xf32>
    %31 = tpu.matmul %29, %30, %cst_14 {dimension_numbers = #tpu.dot_dimension_numbers<[1], [0], [0], [1], [0, 0, 1, 1], [], []>} : vector<8x24xf32>, vector<24x64xf32>, vector<8x64xf32> -> vector<8x64xf32>
    %32 = vector.extract_strided_slice %7 {offsets = [0, 0], sizes = [8, 32], strides = [1, 1]} : vector<8x64xf32> to vector<8x32xf32>
    %33 = vector.extract_strided_slice %7 {offsets = [0, 32], sizes = [8, 32], strides = [1, 1]} : vector<8x64xf32> to vector<8x32xf32>
    %34 = vector.extract_strided_slice %15 {offsets = [0, 0], sizes = [8, 32], strides = [1, 1]} : vector<8x192xf32> to vector<8x32xf32>
    %35 = vector.extract_strided_slice %15 {offsets = [0, 32], sizes = [8, 32], strides = [1, 1]} : vector<8x192xf32> to vector<8x32xf32>
    %36 = vector.extract_strided_slice %15 {offsets = [0, 64], sizes = [8, 32], strides = [1, 1]} : vector<8x192xf32> to vector<8x32xf32>
    %37 = vector.extract_strided_slice %15 {offsets = [0, 96], sizes = [8, 32], strides = [1, 1]} : vector<8x192xf32> to vector<8x32xf32>
    %38 = vector.extract_strided_slice %15 {offsets = [0, 128], sizes = [8, 32], strides = [1, 1]} : vector<8x192xf32> to vector<8x32xf32>
    %39 = vector.extract_strided_slice %15 {offsets = [0, 160], sizes = [8, 32], strides = [1, 1]} : vector<8x192xf32> to vector<8x32xf32>
    %40 = vector.extract_strided_slice %23 {offsets = [0, 0], sizes = [8, 32], strides = [1, 1]} : vector<8x64xf32> to vector<8x32xf32>
    %41 = vector.extract_strided_slice %23 {offsets = [0, 32], sizes = [8, 32], strides = [1, 1]} : vector<8x64xf32> to vector<8x32xf32>
    %42 = vector.extract_strided_slice %31 {offsets = [0, 0], sizes = [8, 32], strides = [1, 1]} : vector<8x64xf32> to vector<8x32xf32>
    %43 = vector.extract_strided_slice %31 {offsets = [0, 32], sizes = [8, 32], strides = [1, 1]} : vector<8x64xf32> to vector<8x32xf32>
    %44 = arith.mulf %34, %40 : vector<8x32xf32>
    %45 = arith.mulf %35, %41 : vector<8x32xf32>
    %46 = arith.addf %44, %45 : vector<8x32xf32>
    %47 = arith.mulf %34, %41 : vector<8x32xf32>
    %48 = arith.mulf %35, %40 : vector<8x32xf32>
    %49 = arith.subf %47, %48 : vector<8x32xf32>
    %50 = arith.mulf %36, %42 : vector<8x32xf32>
    %51 = arith.mulf %37, %43 : vector<8x32xf32>
    %52 = arith.addf %50, %51 : vector<8x32xf32>
    %53 = arith.addf %46, %52 : vector<8x32xf32>
    %54 = arith.mulf %36, %43 : vector<8x32xf32>
    %55 = arith.mulf %37, %42 : vector<8x32xf32>
    %56 = arith.subf %54, %55 : vector<8x32xf32>
    %57 = arith.addf %49, %56 : vector<8x32xf32>
    %58 = arith.mulf %32, %53 : vector<8x32xf32>
    %59 = arith.mulf %33, %57 : vector<8x32xf32>
    %60 = arith.addf %58, %59 : vector<8x32xf32>
    %61 = arith.mulf %38, %40 : vector<8x32xf32>
    %62 = arith.mulf %39, %41 : vector<8x32xf32>
    %63 = arith.addf %61, %62 : vector<8x32xf32>
    %64 = arith.mulf %38, %41 : vector<8x32xf32>
    %65 = arith.mulf %39, %40 : vector<8x32xf32>
    %66 = arith.subf %64, %65 : vector<8x32xf32>
    %67 = arith.mulf %42, %63 : vector<8x32xf32>
    %68 = arith.mulf %43, %66 : vector<8x32xf32>
    %69 = arith.addf %67, %68 : vector<8x32xf32>
    %70 = arith.addf %60, %69 : vector<8x32xf32>
    %cst_15 = arith.constant dense<0.000000e+00> : vector<8xf32>
    %71 = vector.multi_reduction <add>, %70, %cst_15 [1] : vector<8x32xf32> to vector<8xf32>
    %72 = vector.shape_cast %71 : vector<8xf32> to vector<8x1xf32>
    %c0_16 = arith.constant 0 : index
    %c0_17 = arith.constant 0 : index
    %73 = vector.load %arg5[%c0_16, %c0_17] : memref<8x1xf32, #tpu.memory_space<vmem>>, vector<8x1xf32>
    tpu.vector_store %arg5[%c0_16, %c0_17], %72 {strides = array<i32>} : memref<8x1xf32, #tpu.memory_space<vmem>>, vector<8x1xf32>,
    return
  }
  func.func @transform_0(%arg0: i32) -> (i32, i32) {
    %c0_i32 = arith.constant 0 : i32
    %c0_i32_0 = arith.constant 0 : i32
    return %arg0, %c0_i32 : i32, i32
  }
  func.func @transform_1(%arg0: i32) -> (i32, i32) {
    %c0_i32 = arith.constant 0 : i32
    %c0_i32_0 = arith.constant 0 : i32
    %c0_i32_1 = arith.constant 0 : i32
    return %c0_i32, %c0_i32_0 : i32, i32
  }
  func.func @transform_2(%arg0: i32) -> (i32, i32) {
    %c0_i32 = arith.constant 0 : i32
    %c0_i32_0 = arith.constant 0 : i32
    %c0_i32_1 = arith.constant 0 : i32
    return %c0_i32, %c0_i32_0 : i32, i32
  }
  func.func @transform_3(%arg0: i32) -> (i32, i32) {
    %c0_i32 = arith.constant 0 : i32
    %c0_i32_0 = arith.constant 0 : i32
    %c0_i32_1 = arith.constant 0 : i32
    return %c0_i32, %c0_i32_0 : i32, i32
  }
  func.func @transform_4(%arg0: i32) -> (i32, i32) {
    %c0_i32 = arith.constant 0 : i32
    %c0_i32_0 = arith.constant 0 : i32
    return %arg0, %c0_i32 : i32, i32
  }
}

</mosaic_0001>

<bundles_post_ra>
// kernel: timeplex_forward.1
= control target key start
LH: loop header
LB: loop body
LE: loop exit
PB: predicated region body
PF: predicated region fallthrough
CT: control target
= control target key end

     0   :  { %v523_v0 = vmov 1   ;;  %v524_v1 = vmov 0   ;;  %v525_v5 = vmov 0.0   ;;  %v526_v10 = vmov 3   ;;  %s530_s12 = smov 32   ;;  %s531_s13 = smov 64   ;;  %s643_s0 = inlined_call_operand.vmem [shape: s32[8,4], index: 0, kind: input, shape index: {}]   ;;  %s644_s1 = inlined_call_operand.vmem [shape: f32[40,64], index: 1, kind: input, shape index: {}]   ;;  %s645_s2 = inlined_call_operand.vmem [shape: f32[16,192], index: 2, kind: input, shape index: {}]   ;;  %s646_s3 = inlined_call_operand.vmem [shape: f32[24,64], index: 3, kind: input, shape index: {}]   ;;  %s647_s4 = inlined_call_operand.vmem [shape: f32[8,1], index: 4, kind: output, shape index: {}]  }
   0x1   :  { %521 = vset.pattern.permute.xlu1 %v523_v0  ;;  %519 = vset.pattern.permute.xlu0 %v524_v1  ;;  %v17_v2 = vld [vmem:[%s643_s0] sm:$0xff]  ;;  %v114_v4 = vld [vmem:[%s645_s2 + $0x18] sm:$0xff]  ;;  %v113_v6 = vld [vmem:[%s645_s2 + $0x10] sm:$0xff]  ;;  %v527_v11 = vmov 2   ;;  %vm528_vm0 = vmmov 0   ;;  %v18_v15 = vlaneseq  ;;  %vm31_vm1 = vcmask 326656  }
   0x2   :  { %v30_v3 = vld [vmem:[%s644_s1 + $0x20] sm:$0xff]  ;;  %106 = vperm.xlu1 %521, %v17_v2   ;;  %21 = vperm.xlu0 %519, %v17_v2   ;;  %v112_v7 = vld [vmem:[%s645_s2 + $0x8] sm:$0xff]  ;;  %v29_v8 = vld [vmem:[%s644_s1 + $0x18] sm:$0xff]  ;;  %vm115_vm2 = vcmask 130048   ;;  %vm278_vm6 = vcmask 195584   ;;  %vm441_vm8 = vcmask 261120  }
   0x3   :  { %475 = vmatprep.subr.mxu0 %v525_v5  ;;  %147 = vmatprep.subr.mxu1 %v114_v4  ;;  %v111_v9 = vld [vmem:[%s645_s2] sm:$0xff]  ;;  %v28_v12 = vld [vmem:[%s644_s1 + $0x10] sm:$0xff]  ;;  %v27_v13 = vld [vmem:[%s644_s1 + $0x8] sm:$0xff]  ;;  %v19_v16 = vand.u32 127, %v18_v15  ;;  %vm445_vm9 = vcmask 7168  }
   0x4   :  { %476 = vmatpush3.msra.mxu0 %v30_v3  ;;  %148 = vmatpush1.msra.mxu1 %v113_v6  ;;  %v26_v14 = vld [vmem:[%s644_s1] sm:$0xff]  ;;  %v277_v19 = vld [vmem:[%s646_s3 + $0x10] sm:$0xff]  ;;  %v276_v22 = vld [vmem:[%s646_s3 + $0x8] sm:$0xff] }
   0x5   :  { %477 = vmatprep.subr.mxu0 %v525_v5  ;;  %149 = vmatprep.subr.mxu1 %v112_v7  ;;  %v275_v24 = vld [vmem:[%s646_s3] sm:$0xff]  ;;  %s529_s3 = smov 96  }
   0x6   :  { %520 = vset.pattern.permute.xlu0 %v526_v10  ;;  %522 = vset.pattern.permute.xlu1 %v527_v11 }
   0x7   :  { %270 = vperm.xlu0 %520, %v17_v2   ;;  %191 = vperm.xlu1 %522, %v17_v2  }
   0x8   :  { %478 = vmatpush3.msra.mxu0 %v29_v8  ;;  %150 = vmatpush1.msra.mxu1 %v111_v9 }
   0x9   :  { %479 = vmatprep.subr.mxu0 %v525_v5  ;;  %485 = vmatprep.mubr.msk.f32.mxu0 %vm528_vm0, %v525_v5 }
   0xa   :  { %480 = vmatpush3.msra.mxu0 %v28_v12  ;;  %183 = vmatprep.mubr.f32.mxu1 %v525_v5 }
   0xb   :  { %481 = vmatprep.subr.mxu0 %v525_v5  ;;  %488 = vmatprep.subr.mxu1 %v525_v5 }
   0xc   :  { %482 = vmatpush3.msra.mxu0 %v27_v13 }
   0xd   :  { %483 = vmatprep.subr.mxu0 %v525_v5 }
   0xe   :  { %484 = vmatpush3.msra.mxu0 %v26_v14 }
   0xf   :  { %501 = vmatprep.subr.mxu0 %v525_v5 }
  0x7d   :  { %v107_v17 = vpop.permute.xlu1 %106  ;;  %v22_v18 = vpop.permute.xlu0 %21 }
  0x7e   :  { %vm108_vm3 = vcmp.eq.s32.totalorder %v19_v16, %v107_v17  ;;  %vm23_vm4 = vcmp.eq.s32.totalorder %v19_v16, %v22_v18 }
  0x7f   :  { %v453_v20 = vsel %vm108_vm3, 1.0, %v525_v5  ;;  %v451_v21 = vsel %vm23_vm4, 1.0, %v525_v5 }
  0x80   :  { %486 = vmatmul.mubr.msk.f32.vlgmr.msra.gmra.mxu0 %vm31_vm1, %v451_v21  ;;  %454 = vmatmul.mubr.msk.f32.vlgmr.msra.gmra.mxu1 %vm115_vm2, %v453_v20 }
  0x81   :  { %489 = vmatpush3.msra.mxu1 %v30_v3  ;;  %502 = vmatpush3.msra.mxu0 %v277_v19 }
  0x82   :  { %490 = vmatprep.subr.mxu1 %v525_v5  ;;  %503 = vmatprep.subr.mxu0 %v525_v5  ;;  %v271_v23 = vpop.permute.xlu0 %270  ;;  %v192_v25 = vpop.permute.xlu1 %191 }
  0x83   :  { %491 = vmatpush3.msra.mxu1 %v29_v8  ;;  %504 = vmatpush3.msra.mxu0 %v276_v22  ;;  %vm272_vm5 = vcmp.eq.s32.totalorder %v19_v16, %v271_v23  ;;  %vm193_vm7 = vcmp.eq.s32.totalorder %v19_v16, %v192_v25 }
  0x84   :  { %v457_v26 = vsel %vm272_vm5, 1.0, %v525_v5  ;;  %492 = vmatprep.subr.mxu1 %v525_v5  ;;  %505 = vmatprep.subr.mxu0 %v525_v5  ;;  %v455_v27 = vsel %vm193_vm7, 1.0, %v525_v5 }
  0x85   :  { %493 = vmatpush3.msra.mxu1 %v28_v12  ;;  %506 = vmatpush3.msra.mxu0 %v275_v24 }
  0x86   :  { %507 = vmatprep.mubr.msk.f32.mxu0 %vm528_vm0, %v525_v5  ;;  %494 = vmatprep.subr.mxu1 %v525_v5 }
  0x87   :  { %508 = vmatmul.mubr.msk.f32.vlgmr.msra.gmra.mxu0 %vm278_vm6, %v457_v26  ;;  %495 = vmatpush3.msra.mxu1 %v27_v13 }
  0x88   :  { %496 = vmatprep.subr.mxu1 %v525_v5  ;;  %498 = vmatprep.mubr.msk.f32.mxu1 %vm528_vm0, %v525_v5 }
  0x89   :  { %497 = vmatpush3.msra.mxu1 %v26_v14 }
  0x8a   :  { %499 = vmatmul.mubr.msk.f32.vlgmr.msra.gmra.mxu1 %vm31_vm1, %v455_v27 }
 0x140   :  { %v622_v28 = vpop.f32.mrf.mxu0  ;;  %v185_v30 = vpop.f32.mrf.mxu1 }
 0x142   :  { %v487_v29 = vpop.f32.mrf.mxu0  ;;  %v187_v31 = vpop.f32.mrf.mxu1 }
 0x147   :  { %v348_v32 = vpop.f32.mrf.mxu0 }
 0x148   :  { %391 = vrot.lane.b32.xlu1 %v348_v32, %s529_s3 }
 0x149   :  { %v509_v33 = vpop.f32.mrf.mxu0 }
 0x14a   :  { %v265_v34 = vpop.f32.mrf.mxu1 }
 0x14b   :  { %363 = vrot.lane.b32.xlu0 %v265_v34, %s530_s12  ;;  %v352_v58 = vmul.f32 %v265_v34, %v185_v30  ;;  %v416_v59 = vmul.f32 %v265_v34, %v187_v31 }
 0x14c   :  { %387 = vrot.lane.b32.xlu1 %v348_v32, %s530_s12  ;;  %v500_v35 = vpop.f32.mrf.mxu1 }
 0x150   :  { %359 = vrot.lane.b32.xlu1 %v265_v34, %s529_s3 }
 0x1ba   :  { %v392_v36 = vpop.permute.xlu1 %391 }
 0x1bb   :  { %v394_v37 = vmul.f32 %v392_v36, %v185_v30 }
 0x1bd   :  { %396 = vrot.lane.b32.xlu0 %v394_v37, %s529_s3  ;;  %v364_v38 = vpop.permute.xlu0 %363 }
 0x1be   :  { %v366_v39 = vmul.f32 %v364_v38, %v185_v30  ;;  %v423_v40 = vmul.f32 %v364_v38, %v187_v31  ;;  %v388_v41 = vpop.permute.xlu1 %387 }
 0x1bf   :  { %v390_v42 = vmul.f32 %v388_v41, %v185_v30 }
 0x1c0   :  { %368 = vrot.lane.b32.xlu1 %v366_v39, %s529_s3 }
 0x1c1   :  { %373 = vrot.lane.b32.xlu0 %v348_v32, %s531_s13 }
 0x1c2   :  { %v360_v43 = vpop.permute.xlu1 %359 }
 0x1c3   :  { %v422_v49 = vmul.f32 %v360_v43, %v187_v31  ;;  %v362_v52 = vmul.f32 %v360_v43, %v185_v30 }
 0x1c4   :  { %425 = vrot.lane.b32.xlu1 %v423_v40, %s529_s3 }
 0x22f   :  { %v397_v44 = vpop.permute.xlu0 %396 }
 0x230   :  { %v399_v45 = vsub.f32 %v390_v42, %v397_v44 }
 0x232   :  { %401 = vrot.lane.b32.xlu0 %v399_v45, %s531_s13  ;;  %v369_v46 = vpop.permute.xlu1 %368 }
 0x233   :  { %v374_v47 = vpop.permute.xlu0 %373  ;;  %v371_v53 = vsub.f32 %v362_v52, %v369_v46 }
 0x234   :  { %v376_v48 = vmul.f32 %v374_v47, %v185_v30 }
 0x236   :  { %378 = vrot.lane.b32.xlu0 %v376_v48, %s529_s3  ;;  %v426_v50 = vpop.permute.xlu1 %425 }
 0x237   :  { %v428_v51 = vsub.f32 %v422_v49, %v426_v50 }
 0x23a   :  { %431 = vrot.lane.b32.xlu0 %v428_v51, %s530_s12 }
 0x2a4   :  { %v402_v54 = vpop.permute.xlu0 %401 }
 0x2a5   :  { %v404_v55 = vadd.f32 %v402_v54, %v371_v53 }
 0x2a7   :  { %407 = vrot.lane.b32.xlu1 %v404_v55, %s530_s12 }
 0x2a8   :  { %v379_v56 = vpop.permute.xlu0 %378 }
 0x2a9   :  { %v381_v57 = vadd.f32 %v379_v56, %v376_v48 }
 0x2ab   :  { %354 = vrot.lane.b32.xlu1 %v352_v58, %s529_s3  ;;  %383 = vrot.lane.b32.xlu0 %v381_v57, %s531_s13 }
 0x2ac   :  { %v432_v60 = vpop.permute.xlu0 %431 }
 0x2ad   :  { %v434_v61 = vmul.f32 %v432_v60, %v348_v32 }
 0x2af   :  { %418 = vrot.lane.b32.xlu1 %v416_v59, %s529_s3 }
 0x2b3   :  { %436 = vrot.lane.b32.xlu1 %v434_v61, %s529_s3 }
 0x319   :  { %v408_v62 = vpop.permute.xlu1 %407 }
 0x31a   :  { %v410_v63 = vmul.f32 %v408_v62, %v622_v28 }
 0x31c   :  { %412 = vrot.lane.b32.xlu0 %v410_v63, %s529_s3 }
 0x31d   :  { %v355_v0 = vpop.permute.xlu1 %354  ;;  %v384_v4 = vpop.permute.xlu0 %383 }
 0x31e   :  { %v357_v2 = vadd.f32 %v355_v0, %v352_v58 }
 0x320   :  { %v386_v5 = vadd.f32 %v384_v4, %v357_v2 }
 0x321   :  { %v419_v1 = vpop.permute.xlu1 %418 }
 0x322   :  { %v421_v3 = vadd.f32 %v419_v1, %v416_v59  ;;  %v405_v8 = vmul.f32 %v386_v5, %v622_v28 }
 0x324   :  { %v429_v6 = vmul.f32 %v421_v3, %v348_v32 }
 0x325   :  { %v437_v7 = vpop.permute.xlu1 %436 }
 0x326   :  { %v439_v10 = vadd.f32 %v437_v7, %v429_v6 }
 0x38e   :  { %v413_v9 = vpop.permute.xlu0 %412 }
 0x38f   :  { %v415_v11 = vadd.f32 %v413_v9, %v405_v8 }
 0x391   :  { %v440_v12 = vadd.f32 %v439_v10, %v415_v11 }
 0x393   :  { %v442_v13 = vsel %vm441_vm8, %v440_v12, 0.0 }
 0x394   :  { %443 = vadd.xlane.f32.xlu0 %v442_v13 }
 0x41d   :  { %v444_v14 = vpop.xlane.xlu0 %443 }
 0x41e   :  { %446 = vst.msk [vmem:[%s647_s4] sm:$0xff] %vm445_vm9, %v444_v14 }

</bundles_post_ra>
